<compile_context>
chip_gen: v5e
topology: v5e:2x2
jax: 0.10.0
libtpu: 0.0.40
codegen_flags: <defaults>
</compile_context>

<pallas_src>
import functools

import jax
import jax.numpy as jnp
from jax.experimental import pallas as pl
from jax.experimental.pallas import tpu as pltpu

LANE = 128      # vreg lane width (last dim)
SUBLANE = 8     # f32 sublane count (second-to-last dim)


def _round_up(n, m):
    return ((n + m - 1) // m) * m


def dqn_kernel(x_ref, w1_ref, w2_ref, w3_ref, w4_ref, b_ref, o_ref, *, splits):
    """One batch tile: 4 chained MXU matmuls; all output dims lane-dense (128)."""
    p1, p2, p3, p4 = splits
    b1 = b_ref[:, 0:p1]
    b2 = b_ref[:, p1:p1 + p2]
    b3 = b_ref[:, p1 + p2:p1 + p2 + p3]
    b4 = b_ref[:, p1 + p2 + p3:p1 + p2 + p3 + p4]

    h = jnp.dot(x_ref[...], w1_ref[...], preferred_element_type=jnp.float32)
    h = jnp.maximum(h + b1, 0.0)
    h = jnp.dot(h, w2_ref[...], preferred_element_type=jnp.float32)
    h = jnp.maximum(h + b2, 0.0)
    h = jnp.dot(h, w3_ref[...], preferred_element_type=jnp.float32)
    h = jnp.maximum(h + b3, 0.0)
    out = jnp.dot(h, w4_ref[...], preferred_element_type=jnp.float32)
    o_ref[...] = (out + b4).astype(o_ref.dtype)


def prepare_params(params):
    """One-time (per-parameter-set) padding/concatenation of the weights.

    params: list of (w, b), w: [in, out] (transposed vs nn.Linear), b: [1, out].
    Returns (prepared_operands, meta) to pass to dqn_forward.
    """
    (w1, b1), (w2, b2), (w3, b3), (w4, b4) = params
    state_size = w1.shape[0]
    action_size = w4.shape[1]

    d0 = _round_up(state_size, SUBLANE)   # first-matmul K: sublane-aligned only
    d1 = _round_up(w1.shape[1], LANE)     # all output dims lane-dense (128)
    d2 = _round_up(w2.shape[1], LANE)
    d3 = _round_up(w3.shape[1], LANE)
    d4 = _round_up(w4.shape[1], LANE)

    def pad2(a, rows, cols):
        return jnp.pad(a, ((0, rows - a.shape[0]), (0, cols - a.shape[1])))

    w1p = pad2(w1, d0, d1)
    w2p = pad2(w2, d1, d2)
    w3p = pad2(w3, d2, d3)
    w4p = pad2(w4, d3, d4)
    # One concatenated, lane-padded bias operand (fewer operands / DMAs).
    bcat = jnp.concatenate(
        [pad2(b1, 1, d1), pad2(b2, 1, d2), pad2(b3, 1, d3), pad2(b4, 1, d4)],
        axis=1)

    prepared = (w1p, w2p, w3p, w4p, bcat)
    meta = {"state_size": state_size, "action_size": action_size,
            "d0": d0, "splits": (d1, d2, d3, d4)}
    return prepared, meta


def dqn_forward(x, prepared, meta, *, max_batch_tile=1024):
    """x: [B, state_size] f32. prepared/meta from prepare_params().
    Returns [B, action_size] f32."""
    w1p, w2p, w3p, w4p, bcat = prepared
    state_size = meta["state_size"]
    action_size = meta["action_size"]
    d0 = meta["d0"]
    d1, d2, d3, d4 = meta["splits"]
    B = x.shape[0]

    # Batch tiling: tb is a multiple of 8 sublanes.  For larger batches force
    # >= 2 grid steps so the "parallel" axis actually uses both v7x TensorCores.
    if B > 2 * SUBLANE:
        tb = min(max_batch_tile, _round_up((B + 1) // 2, SUBLANE))
    else:
        tb = min(max_batch_tile, _round_up(B, SUBLANE))
    bp = _round_up(B, tb)

    # x stays lane-UNpadded in HBM (no 8x read amplification).  Only pad batch
    # rows up to the grid (and, if state_size isn't sublane-aligned, a few
    # feature columns); for aligned shapes this branch is skipped entirely.
    xp = x
    if bp != B or d0 != state_size:
        xp = jnp.pad(x, ((0, bp - B), (0, d0 - state_size)))

    grid = (bp // tb,)
    kernel = functools.partial(dqn_kernel, splits=(d1, d2, d3, d4))

    # Weights / biases: constant index_map -> stay resident in VMEM across steps.
    resident = lambda a: pl.BlockSpec(a.shape, lambda i: (0,) * a.ndim)

    out_padded = pl.pallas_call(
        kernel,
        out_shape=jax.ShapeDtypeStruct((bp, d4), jnp.float32),
        grid=grid,
        in_specs=[
            pl.BlockSpec((tb, d0), lambda i: (i, 0)),   # x tile (pipelined)
            resident(w1p), resident(w2p), resident(w3p), resident(w4p),
            resident(bcat),
        ],
        out_specs=pl.BlockSpec((tb, d4), lambda i: (i, 0)),
        compiler_params=pltpu.CompilerParams(
            dimension_semantics=("parallel",),      # megacore split on v7x
            vmem_limit_bytes=32 << 20,              # safe on v5e/v6e/v7x
        ),
    )(xp, w1p, w2p, w3p, w4p, bcat)

    return out_padded[:B, :action_size]


def init_params(key, state_size, hidden_size, action_size):
    """Matches PyTorch _init_weights: kaiming_normal_(mode='fan_out',
    nonlinearity='relu') -> std = sqrt(2 / out_features); bias = 0.
    Stored as w: [in, out] (transposed vs nn.Linear), b: [1, out]."""
    dims = [(state_size, hidden_size),
            (hidden_size, hidden_size),
            (hidden_size, hidden_size // 2),
            (hidden_size // 2, action_size)]
    params = []
    for din, dout in dims:
        key, sub = jax.random.split(key)
        std = (2.0 / dout) ** 0.5
        w = jax.random.normal(sub, (din, dout), dtype=jnp.float32) * std
        b = jnp.zeros((1, dout), dtype=jnp.float32)
        params.append((w, b))
    return params


def dqn_reference(x, params):
    h = x
    for i, (w, b) in enumerate(params):
        h = h @ w + b
        if i < len(params) - 1:
            h = jnp.maximum(h, 0.0)
    return h


if __name__ == "__main__":
    state_size, hidden_size, action_size = 16, 32, 4
    batch = 8

    key = jax.random.PRNGKey(0)
    key, xk = jax.random.split(key)
    x = jax.random.normal(xk, (batch, state_size), dtype=jnp.float32)

    params = init_params(key, state_size, hidden_size, action_size)
    # Pad/concat the weights ONCE, outside the per-call path.
    prepared, meta = prepare_params(params)
    prepared = jax.block_until_ready(prepared)

    out = dqn_forward(x, prepared, meta)
    out = jax.block_until_ready(out)

    ref = dqn_reference(x, params)
    assert out.shape == (batch, action_size), out.shape
    assert jnp.allclose(out, ref, atol=1e-5, rtol=1e-5), "mismatch vs reference"

    # A batch that exercises the >=2-step grid (two tiles -> both v7x cores).
    key, xk2 = jax.random.split(key)
    x_big = jax.random.normal(xk2, (1000, state_size), dtype=jnp.float32)
    out_big = jax.block_until_ready(dqn_forward(x_big, prepared, meta))
    ref_big = dqn_reference(x_big, params)
    assert out_big.shape == (1000, action_size), out_big.shape
    assert jnp.allclose(out_big, ref_big, atol=1e-4, rtol=1e-4), "mismatch (big batch)"

    print("KERNEL_OK")
</pallas_src>

<mosaic_0001>
module attributes {stable_mosaic.version = 11 : i64} {
  func.func @dqn_kernel(%arg0: i32, %arg1: memref<8x16xf32, #tpu.memory_space<vmem>>, %arg2: memref<16x128xf32, #tpu.memory_space<vmem>>, %arg3: memref<128x128xf32, #tpu.memory_space<vmem>>, %arg4: memref<128x128xf32, #tpu.memory_space<vmem>>, %arg5: memref<128x128xf32, #tpu.memory_space<vmem>>, %arg6: memref<1x512xf32, #tpu.memory_space<vmem>>, %arg7: memref<8x128xf32, #tpu.memory_space<vmem>>) attributes {dimension_semantics = [#tpu.dimension_semantics<parallel>], iteration_bounds = array<i64: 1>, scalar_prefetch = 0 : i64, scratch_operands = 0 : i64, tpu.core_type = #tpu.core_type<tc>, window_params = [{transform_indices = @transform_0, window_bounds = array<i64: 8, 16>}, {pipeline_mode = #tpu.pipeline_mode<synchronous>, transform_indices = @transform_1, window_bounds = array<i64: 16, 128>}, {pipeline_mode = #tpu.pipeline_mode<synchronous>, transform_indices = @transform_2, window_bounds = array<i64: 128, 128>}, {pipeline_mode = #tpu.pipeline_mode<synchronous>, transform_indices = @transform_3, window_bounds = array<i64: 128, 128>}, {pipeline_mode = #tpu.pipeline_mode<synchronous>, transform_indices = @transform_4, window_bounds = array<i64: 128, 128>}, {pipeline_mode = #tpu.pipeline_mode<synchronous>, transform_indices = @transform_5, window_bounds = array<i64: 1, 512>}, {transform_indices = @transform_6, window_bounds = array<i64: 8, 128>}]} {
    %c0 = arith.constant 0 : index
    %c0_0 = arith.constant 0 : index
    %0 = vector.load %arg6[%c0, %c0_0] : memref<1x512xf32, #tpu.memory_space<vmem>>, vector<1x128xf32>
    %c0_1 = arith.constant 0 : index
    %c128 = arith.constant 128 : index
    %1 = vector.load %arg6[%c0_1, %c128] : memref<1x512xf32, #tpu.memory_space<vmem>>, vector<1x128xf32>
    %c0_2 = arith.constant 0 : index
    %c256 = arith.constant 256 : index
    %2 = vector.load %arg6[%c0_2, %c256] : memref<1x512xf32, #tpu.memory_space<vmem>>, vector<1x128xf32>
    %c0_3 = arith.constant 0 : index
    %c384 = arith.constant 384 : index
    %3 = vector.load %arg6[%c0_3, %c384] : memref<1x512xf32, #tpu.memory_space<vmem>>, vector<1x128xf32>
    %c0_4 = arith.constant 0 : index
    %c0_5 = arith.constant 0 : index
    %4 = vector.load %arg1[%c0_4, %c0_5] : memref<8x16xf32, #tpu.memory_space<vmem>>, vector<8x16xf32>
    %c0_6 = arith.constant 0 : index
    %c0_7 = arith.constant 0 : index
    %5 = vector.load %arg2[%c0_6, %c0_7] : memref<16x128xf32, #tpu.memory_space<vmem>>, vector<16x128xf32>
    %cst = arith.constant dense<0.000000e+00> : vector<8x128xf32>
    %6 = tpu.matmul %4, %5, %cst {dimension_numbers = #tpu.dot_dimension_numbers<[1], [0], [0], [1], [0, 0, 1, 1], [], []>} : vector<8x16xf32>, vector<16x128xf32>, vector<8x128xf32> -> vector<8x128xf32>
    %7 = vector.broadcast %0 : vector<1x128xf32> to vector<8x128xf32>
    %8 = arith.addf %6, %7 : vector<8x128xf32>
    %cst_8 = arith.constant 0.000000e+00 : f32
    %9 = vector.broadcast %cst_8 : f32 to vector<8x128xf32>
    %10 = arith.maximumf %8, %9 : vector<8x128xf32>
    %c0_9 = arith.constant 0 : index
    %c0_10 = arith.constant 0 : index
    %11 = vector.load %arg3[%c0_9, %c0_10] : memref<128x128xf32, #tpu.memory_space<vmem>>, vector<128x128xf32>
    %cst_11 = arith.constant dense<0.000000e+00> : vector<8x128xf32>
    %12 = tpu.matmul %10, %11, %cst_11 {dimension_numbers = #tpu.dot_dimension_numbers<[1], [0], [0], [1], [0, 0, 1, 1], [], []>} : vector<8x128xf32>, vector<128x128xf32>, vector<8x128xf32> -> vector<8x128xf32>
    %13 = vector.broadcast %1 : vector<1x128xf32> to vector<8x128xf32>
    %14 = arith.addf %12, %13 : vector<8x128xf32>
    %cst_12 = arith.constant 0.000000e+00 : f32
    %15 = vector.broadcast %cst_12 : f32 to vector<8x128xf32>
    %16 = arith.maximumf %14, %15 : vector<8x128xf32>
    %c0_13 = arith.constant 0 : index
    %c0_14 = arith.constant 0 : index
    %17 = vector.load %arg4[%c0_13, %c0_14] : memref<128x128xf32, #tpu.memory_space<vmem>>, vector<128x128xf32>
    %cst_15 = arith.constant dense<0.000000e+00> : vector<8x128xf32>
    %18 = tpu.matmul %16, %17, %cst_15 {dimension_numbers = #tpu.dot_dimension_numbers<[1], [0], [0], [1], [0, 0, 1, 1], [], []>} : vector<8x128xf32>, vector<128x128xf32>, vector<8x128xf32> -> vector<8x128xf32>
    %19 = vector.broadcast %2 : vector<1x128xf32> to vector<8x128xf32>
    %20 = arith.addf %18, %19 : vector<8x128xf32>
    %cst_16 = arith.constant 0.000000e+00 : f32
    %21 = vector.broadcast %cst_16 : f32 to vector<8x128xf32>
    %22 = arith.maximumf %20, %21 : vector<8x128xf32>
    %c0_17 = arith.constant 0 : index
    %c0_18 = arith.constant 0 : index
    %23 = vector.load %arg5[%c0_17, %c0_18] : memref<128x128xf32, #tpu.memory_space<vmem>>, vector<128x128xf32>
    %cst_19 = arith.constant dense<0.000000e+00> : vector<8x128xf32>
    %24 = tpu.matmul %22, %23, %cst_19 {dimension_numbers = #tpu.dot_dimension_numbers<[1], [0], [0], [1], [0, 0, 1, 1], [], []>} : vector<8x128xf32>, vector<128x128xf32>, vector<8x128xf32> -> vector<8x128xf32>
    %25 = vector.broadcast %3 : vector<1x128xf32> to vector<8x128xf32>
    %26 = arith.addf %24, %25 : vector<8x128xf32>
    %c0_20 = arith.constant 0 : index
    %c0_21 = arith.constant 0 : index
    %27 = vector.load %arg7[%c0_20, %c0_21] : memref<8x128xf32, #tpu.memory_space<vmem>>, vector<8x128xf32>
    tpu.vector_store %arg7[%c0_20, %c0_21], %26 {strides = array<i32>} : memref<8x128xf32, #tpu.memory_space<vmem>>, vector<8x128xf32>,
    return
  }
  func.func @transform_0(%arg0: i32) -> (i32, i32) {
    %c0_i32 = arith.constant 0 : i32
    %c0_i32_0 = arith.constant 0 : i32
    return %arg0, %c0_i32 : i32, i32
  }
  func.func @transform_1(%arg0: i32) -> (i32, i32) {
    %c0_i32 = arith.constant 0 : i32
    %c0_i32_0 = arith.constant 0 : i32
    %c0_i32_1 = arith.constant 0 : i32
    return %c0_i32, %c0_i32_0 : i32, i32
  }
  func.func @transform_2(%arg0: i32) -> (i32, i32) {
    %c0_i32 = arith.constant 0 : i32
    %c0_i32_0 = arith.constant 0 : i32
    %c0_i32_1 = arith.constant 0 : i32
    return %c0_i32, %c0_i32_0 : i32, i32
  }
  func.func @transform_3(%arg0: i32) -> (i32, i32) {
    %c0_i32 = arith.constant 0 : i32
    %c0_i32_0 = arith.constant 0 : i32
    %c0_i32_1 = arith.constant 0 : i32
    return %c0_i32, %c0_i32_0 : i32, i32
  }
  func.func @transform_4(%arg0: i32) -> (i32, i32) {
    %c0_i32 = arith.constant 0 : i32
    %c0_i32_0 = arith.constant 0 : i32
    %c0_i32_1 = arith.constant 0 : i32
    return %c0_i32, %c0_i32_0 : i32, i32
  }
  func.func @transform_5(%arg0: i32) -> (i32, i32) {
    %c0_i32 = arith.constant 0 : i32
    %c0_i32_0 = arith.constant 0 : i32
    %c0_i32_1 = arith.constant 0 : i32
    return %c0_i32, %c0_i32_0 : i32, i32
  }
  func.func @transform_6(%arg0: i32) -> (i32, i32) {
    %c0_i32 = arith.constant 0 : i32
    %c0_i32_0 = arith.constant 0 : i32
    return %arg0, %c0_i32 : i32, i32
  }
}

</mosaic_0001>

<bundles_post_ra>
// kernel: tpu_custom_call.1
= control target key start
LH: loop header
LB: loop body
LE: loop exit
PB: predicated region body
PF: predicated region fallthrough
CT: control target
= control target key end

     0   :  { %11 = vsyncpa [#allocation3], 0  ;;  %s512_s0 = inlined_call_operand.hbm [shape: f32[8,16], index: 0, kind: input, shape index: {}]   ;;  %s513_s1 = inlined_call_operand.hbm [shape: f32[16,128], index: 1, kind: input, shape index: {}]   ;;  %s514_s2 = inlined_call_operand.hbm [shape: f32[128,128], index: 2, kind: input, shape index: {}]   ;;  %s515_s3 = inlined_call_operand.hbm [shape: f32[128,128], index: 3, kind: input, shape index: {}]   ;;  %s516_s4 = inlined_call_operand.hbm [shape: f32[128,128], index: 4, kind: input, shape index: {}]   ;;  %s517_s5 = inlined_call_operand.vmem [shape: f32[1,512], index: 5, kind: input, shape index: {}]   ;;  %s518_s6 = inlined_call_operand.hbm [shape: f32[8,128], index: 6, kind: output, shape index: {}]  }
   0x1   :  { %12 = vsyncpa [#allocation6], 0 }
   0x2   :  { %13 = vsyncpa [#allocation9], 0  ;;  %s30_s23 = sshll.u32 %s513_s1, 4  ;;  %s31_s23 = int_to_ptr.hbm [resolvable:$true] %s30_s23 }
   0x3   :  { %14 = vsyncpa [#allocation4], 0  ;;  %s439_s24 = smov [#allocation5]   ;;  %s56_s28 = sshll.u32 %s515_s3, 4  ;;  %s57_s28 = int_to_ptr.hbm [resolvable:$true] %s56_s28 }
   0x4   :  { %s32_s25 = sshll.u32 %s439_s24, 4  ;;  %s440_s29 = smov 128   ;;  %s33_s25 = int_to_ptr.vmem [resolvable:$true] %s32_s25 }
   0x5   :  { %s441_s30 = smov 8   ;;  %s442_s7 = smov [#allocation8]  }
   0x6   :  { %38 = dma.hbm_to_vmem [thread:$0]  %s31_s23, 256, %s33_s25, [#allocation6], %s440_s29, %s440_s29, %s441_s30  }
   0x7   :  { %s58_s8 = sshll.u32 %s442_s7, 4  ;;  %s20_s11 = sshll.u32 %s512_s0, 4  ;;  %s59_s8 = int_to_ptr.vmem [resolvable:$true] %s58_s8  ;;  %s21_s11 = int_to_ptr.hbm [resolvable:$true] %s20_s11 }
   0x8   :  { %64 = dma.hbm_to_vmem [thread:$0]  %s57_s28, 2048, %s59_s8, [#allocation9], %s440_s29, %s440_s29, %s441_s30  }
   0x9   :  { %s43_s13 = sshll.u32 %s514_s2, 4  ;;  %s443_s14 = smov [#allocation2]   ;;  %s44_s13 = int_to_ptr.hbm [resolvable:$true] %s43_s13 }
   0xa   :  { %s22_s15 = sshll.u32 %s443_s14, 4  ;;  %s444_s3 = smov [#allocation7]   ;;  %s23_s15 = int_to_ptr.vmem [resolvable:$true] %s22_s15 }
   0xb   :  { %25 = dma.hbm_to_vmem [thread:$0]  %s21_s11, 128, %s23_s15, [#allocation3]  }
   0xc   :  { %s45_s16 = sshll.u32 %s444_s3, 4  ;;  %s69_s19 = sshll.u32 %s516_s4, 4  ;;  %s46_s16 = int_to_ptr.vmem [resolvable:$true] %s45_s16  ;;  %s70_s19 = int_to_ptr.hbm [resolvable:$true] %s69_s19 }
   0xd   :  { %51 = dma.hbm_to_vmem [thread:$0]  %s44_s13, 2048, %s46_s16, [#allocation6], %s440_s29, %s440_s29, %s441_s30  }
   0xe   :  { %s445_s0 = smov [#allocation10]  }
   0xf   :  { %s71_s20 = sshll.u32 %s445_s0, 4  ;;  %s72_s20 = int_to_ptr.vmem [resolvable:$true] %s71_s20 }
  0x10   :  { %77 = dma.hbm_to_vmem [thread:$0]  %s70_s19, 2048, %s72_s20, [#allocation9], %s440_s29, %s440_s29, %s441_s30  }
  0x11   :  { %431 = dma.done.wait [#allocation3], 128  }
  0x12   :  { %432 = vsyncadd [#allocation3], 4294967168 }
  0x13   :  { %433 = dma.done.wait [#allocation6], 2304  }
  0x14   :  { %434 = vsyncadd [#allocation6], 4294964992 }
  0x15   :  { %435 = dma.done.wait [#allocation9], 4096  }
  0x16   :  { %436 = vsyncadd [#allocation9], 4294963200  ;;  %v106_v0 = vld [vmem:[#allocation5 + $0x8] sm:$0xff]  ;;  %v105_v1 = vld [vmem:[#allocation5] sm:$0xff]  ;;  %vm110_vm0 = vcmask 130048   ;;  %s446_s27 = smov [#allocation11]  }
  0x17   :  { %128 = vmatpush.msra.mxu0 %v106_v0  ;;  %v104_v2 = vld [vmem:[#allocation2] sm:$0xff]  ;;  %v150_v3 = vld [vmem:[#allocation7 + $0x78] sm:$0xff]  ;;  %v149_v4 = vld [vmem:[#allocation7 + $0x70] sm:$0xff]  ;;  %s260_s28 = sshll.u32 %s446_s27, 4  ;;  %s262_s7 = sshll.u32 %s518_s6, 4  ;;  %s261_s28 = int_to_ptr.vmem [resolvable:$true] %s260_s28  ;;  %s263_s7 = int_to_ptr.hbm [resolvable:$true] %s262_s7 }
  0x18   :  { %154 = vmatpush.msra.mxu1 %v150_v3  ;;  %v148_v5 = vld [vmem:[#allocation7 + $0x68] sm:$0xff]  ;;  %v147_v6 = vld [vmem:[#allocation7 + $0x60] sm:$0xff]  ;;  %v146_v7 = vld [vmem:[#allocation7 + $0x58] sm:$0xff] }
  0x19   :  { %129 = vmatpush.msra.mxu0 %v105_v1  ;;  %v145_v8 = vld [vmem:[#allocation7 + $0x50] sm:$0xff]  ;;  %v144_v9 = vld [vmem:[#allocation7 + $0x48] sm:$0xff]  ;;  %v143_v10 = vld [vmem:[#allocation7 + $0x40] sm:$0xff] }
  0x1a   :  { %274 = vmatmul.msk.f32.vlgmr.msra.gmra.mxu0 %vm110_vm0, %v104_v2  ;;  %155 = vmatpush.msra.mxu1 %v149_v4  ;;  %v142_v11 = vld [vmem:[#allocation7 + $0x38] sm:$0xff]  ;;  %v141_v12 = vld [vmem:[#allocation7 + $0x30] sm:$0xff]  ;;  %v140_v13 = vld [vmem:[#allocation7 + $0x28] sm:$0xff] }
  0x1b   :  { %v139_v14 = vld [vmem:[#allocation7 + $0x20] sm:$0xff]  ;;  %v138_v15 = vld [vmem:[#allocation7 + $0x18] sm:$0xff]  ;;  %v137_v16 = vld [vmem:[#allocation7 + $0x10] sm:$0xff] }
  0x1c   :  { %156 = vmatpush.msra.mxu1 %v148_v5  ;;  %v136_v17 = vld [vmem:[#allocation7 + $0x8] sm:$0xff]  ;;  %v135_v18 = vld [vmem:[#allocation7] sm:$0xff]  ;;  %v190_v19 = vld [vmem:[#allocation8 + $0x78] sm:$0xff] }
  0x1d   :  { %v189_v20 = vld [vmem:[#allocation8 + $0x70] sm:$0xff]  ;;  %194 = vmatpush.msra.mxu2 %v190_v19  ;;  %v188_v21 = vld [vmem:[#allocation8 + $0x68] sm:$0xff]  ;;  %v187_v22 = vld [vmem:[#allocation8 + $0x60] sm:$0xff] }
  0x1e   :  { %157 = vmatpush.msra.mxu1 %v147_v6  ;;  %v186_v23 = vld [vmem:[#allocation8 + $0x58] sm:$0xff]  ;;  %v185_v24 = vld [vmem:[#allocation8 + $0x50] sm:$0xff]  ;;  %v184_v25 = vld [vmem:[#allocation8 + $0x48] sm:$0xff] }
  0x1f   :  { %195 = vmatpush.msra.mxu2 %v189_v20  ;;  %v183_v26 = vld [vmem:[#allocation8 + $0x40] sm:$0xff]  ;;  %v182_v27 = vld [vmem:[#allocation8 + $0x38] sm:$0xff]  ;;  %v181_v28 = vld [vmem:[#allocation8 + $0x30] sm:$0xff] }
  0x20   :  { %158 = vmatpush.msra.mxu1 %v146_v7  ;;  %v180_v29 = vld [vmem:[#allocation8 + $0x28] sm:$0xff]  ;;  %v179_v30 = vld [vmem:[#allocation8 + $0x20] sm:$0xff]  ;;  %v178_v31 = vld [vmem:[#allocation8 + $0x18] sm:$0xff] }
  0x21   :  { %196 = vmatpush.msra.mxu2 %v188_v21  ;;  %v283_v32 = vld [vmem:[%s517_s5] ss:$0 sm:$0xff]  ;;  %v177_v36 = vld [vmem:[#allocation8 + $0x10] sm:$0xff]  ;;  %v175_v38 = vld [vmem:[#allocation8] sm:$0xff] }
  0x22   :  { %159 = vmatpush.msra.mxu1 %v145_v8  ;;  %v176_v37 = vld [vmem:[#allocation8 + $0x8] sm:$0xff]  ;;  %v230_v39 = vld [vmem:[#allocation10 + $0x78] sm:$0xff]  ;;  %v229_v40 = vld [vmem:[#allocation10 + $0x70] sm:$0xff] }
  0x23   :  { %197 = vmatpush.msra.mxu2 %v187_v22  ;;  %234 = vmatpush.msra.mxu3 %v230_v39  ;;  %v228_v41 = vld [vmem:[#allocation10 + $0x68] sm:$0xff]  ;;  %v227_v42 = vld [vmem:[#allocation10 + $0x60] sm:$0xff]  ;;  %v226_v43 = vld [vmem:[#allocation10 + $0x58] sm:$0xff] }
  0x24   :  { %160 = vmatpush.msra.mxu1 %v144_v9  ;;  %v225_v44 = vld [vmem:[#allocation10 + $0x50] sm:$0xff]  ;;  %v224_v45 = vld [vmem:[#allocation10 + $0x48] sm:$0xff]  ;;  %v223_v46 = vld [vmem:[#allocation10 + $0x40] sm:$0xff] }
  0x25   :  { %198 = vmatpush.msra.mxu2 %v186_v23  ;;  %235 = vmatpush.msra.mxu3 %v229_v40  ;;  %v222_v47 = vld [vmem:[#allocation10 + $0x38] sm:$0xff]  ;;  %v221_v48 = vld [vmem:[#allocation10 + $0x30] sm:$0xff]  ;;  %v220_v49 = vld [vmem:[#allocation10 + $0x28] sm:$0xff] }
  0x26   :  { %161 = vmatpush.msra.mxu1 %v143_v10  ;;  %v219_v50 = vld [vmem:[#allocation10 + $0x20] sm:$0xff]  ;;  %v218_v51 = vld [vmem:[#allocation10 + $0x18] sm:$0xff]  ;;  %v284_v52 = vld [vmem:[%s517_s5 + $0x1] ss:$0 sm:$0xff] }
  0x27   :  { %199 = vmatpush.msra.mxu2 %v185_v24  ;;  %236 = vmatpush.msra.mxu3 %v228_v41  ;;  %v217_v56 = vld [vmem:[#allocation10 + $0x10] sm:$0xff]  ;;  %v216_v57 = vld [vmem:[#allocation10 + $0x8] sm:$0xff]  ;;  %v215_v58 = vld [vmem:[#allocation10] sm:$0xff] }
  0x28   :  { %162 = vmatpush.msra.mxu1 %v142_v11  ;;  %v285_v59 = vld [vmem:[%s517_s5 + $0x2] ss:$0 sm:$0xff]  ;;  %v286_v63 = vld [vmem:[%s517_s5 + $0x3] ss:$0 sm:$0xff] }
  0x29   :  { %200 = vmatpush.msra.mxu2 %v184_v25  ;;  %237 = vmatpush.msra.mxu3 %v227_v42 }
  0x2a   :  { %163 = vmatpush.msra.mxu1 %v141_v12 }
  0x2b   :  { %201 = vmatpush.msra.mxu2 %v183_v26  ;;  %238 = vmatpush.msra.mxu3 %v226_v43 }
  0x2c   :  { %164 = vmatpush.msra.mxu1 %v140_v13 }
  0x2d   :  { %202 = vmatpush.msra.mxu2 %v182_v27  ;;  %239 = vmatpush.msra.mxu3 %v225_v44 }
  0x2e   :  { %165 = vmatpush.msra.mxu1 %v139_v14 }
  0x2f   :  { %203 = vmatpush.msra.mxu2 %v181_v28  ;;  %240 = vmatpush.msra.mxu3 %v224_v45 }
  0x30   :  { %166 = vmatpush.msra.mxu1 %v138_v15 }
  0x31   :  { %204 = vmatpush.msra.mxu2 %v180_v29  ;;  %241 = vmatpush.msra.mxu3 %v223_v46 }
  0x32   :  { %167 = vmatpush.msra.mxu1 %v137_v16 }
  0x33   :  { %205 = vmatpush.msra.mxu2 %v179_v30  ;;  %242 = vmatpush.msra.mxu3 %v222_v47 }
  0x34   :  { %168 = vmatpush.msra.mxu1 %v136_v17 }
  0x35   :  { %206 = vmatpush.msra.mxu2 %v178_v31  ;;  %243 = vmatpush.msra.mxu3 %v221_v48 }
  0x36   :  { %169 = vmatpush.msra.mxu1 %v135_v18 }
  0x37   :  { %207 = vmatpush.msra.mxu2 %v177_v36  ;;  %244 = vmatpush.msra.mxu3 %v220_v49 }
  0x39   :  { %208 = vmatpush.msra.mxu2 %v176_v37  ;;  %245 = vmatpush.msra.mxu3 %v219_v50 }
  0x3b   :  { %209 = vmatpush.msra.mxu2 %v175_v38  ;;  %246 = vmatpush.msra.mxu3 %v218_v51 }
  0x3d   :  { %247 = vmatpush.msra.mxu3 %v217_v56 }
  0x3f   :  { %248 = vmatpush.msra.mxu3 %v216_v57 }
  0x41   :  { %249 = vmatpush.msra.mxu3 %v215_v58 }
  0x97   :  { %v131_v33 = vpop.f32.mrf.mxu0 }
  0x98   :  { %v132_v34 = vadd.f32 %v283_v32, %v131_v33 }
  0x9a   :  { %v134_v35 = vmax.f32 %v132_v34, 0.0 }
  0x9c   :  { %170 = vmatmul.f32.vlgmr.msra.gmra.mxu1 %v134_v35 }
 0x119   :  { %v171_v53 = vpop.f32.mrf.mxu1 }
 0x11a   :  { %v172_v54 = vadd.f32 %v284_v52, %v171_v53 }
 0x11c   :  { %v174_v55 = vmax.f32 %v172_v54, 0.0 }
 0x11e   :  { %210 = vmatmul.f32.vlgmr.msra.gmra.mxu2 %v174_v55 }
 0x1a1   :  { %v211_v60 = vpop.f32.mrf.mxu2 }
 0x1a2   :  { %v212_v61 = vadd.f32 %v285_v59, %v211_v60 }
 0x1a4   :  { %v214_v62 = vmax.f32 %v212_v61, 0.0 }
 0x1a6   :  { %250 = vmatmul.f32.vlgmr.msra.gmra.mxu3 %v214_v62 }
 0x229   :  { %v251_v0 = vpop.f32.mrf.mxu3 }
 0x22a   :  { %v252_v1 = vadd.f32 %v286_v63, %v251_v0 }
 0x22c   :  { %254 = vst [vmem:[#allocation11] sm:$0xff] %v252_v1 }
 0x22d   :  { %265 = dma.vmem_to_hbm [thread:$0]  %s261_s28, 128, %s263_s7, [#allocation4]  }
 0x22e   :  { %437 = dma.done.wait [#allocation4], 128  }
 0x22f   :  { %438 = vsyncadd [#allocation4], 4294967168 }
 0x230   :  { %270 = vsyncpa [#allocation3], 1 }
 0x231   :  { %271 = vsyncpa [#allocation6], 1 }
 0x232   :  { %272 = vsyncpa [#allocation9], 1 }
 0x233   :  { %273 = vsyncpa [#allocation4], 1 }

</bundles_post_ra>
